<compile_context>
chip_gen: v6e
topology: v6e:2x2x1
jax: 0.10.0
libtpu: 0.0.40
codegen_flags: <defaults>
</compile_context>

<pallas_src>
from functools import partial

import jax
import jax.numpy as jnp
from jax.experimental import pallas as pl
from jax.experimental.pallas import tpu as pltpu


_CHUNK = 128  # rows per fused sub-chunk; (128, 128) f32 intermediates = 16 vregs


def value_net_kernel(x_ref, w1_ref, b1_ref, w2_ref, b2_ref, o_ref):
    # x_ref : (TB, d_in)   batch-major (native) tile
    # w1_ref: (d_in, H)    layer-1 weight, rows lane-dense
    # b1_ref: (1, H)       layer-1 bias, lane-dense
    # w2_ref: (1, H)       layer-2 weight, lane-dense
    # b2_ref: (1, 1)       layer-2 bias, SMEM scalar
    # o_ref : (TB, 1)
    tb, d_in = x_ref.shape

    # Hoisted, grid/chunk-invariant weight reads.  Size-1 broadcast dims are
    # left implicit so Mosaic keeps them in replicated layouts rather than
    # materializing broadcasts inside the chunk loop.
    w1_rows = [w1_ref[k:k + 1, :] for k in range(d_in)]   # each (1, H)
    b1 = b1_ref[...]                                      # (1, H)
    w2 = w2_ref[...]                                      # (1, H)
    b2 = b2_ref[0, 0]                                     # scalar from SMEM

    chunk = min(tb, _CHUNK)
    assert tb % chunk == 0, "batch tile must be a multiple of the sub-chunk"

    # Fused per-chunk pipeline: layer-1 FMA -> bias -> ReLU -> *w2 -> lane
    # reduce -> +b2 -> store.  The full (TB, H) hidden tensor never exists.
    # Static Python loop => static slice offsets (cheapest addressing); each
    # chunk's result is stored before the next begins, so live vreg ranges
    # stay bounded (~16 vregs per intermediate).
    for c in range(tb // chunk):
        lo = c * chunk
        acc = x_ref[lo:lo + chunk, 0:1] * w1_rows[0]              # (chunk, H) VPU FMA
        for k in range(1, d_in):                                  # d_in = 2: static unroll
            acc = acc + x_ref[lo:lo + chunk, k:k + 1] * w1_rows[k]
        h = jnp.maximum(acc + b1, 0.0)                            # bias + ReLU
        y = jnp.sum(h * w2, axis=1, keepdims=True) + b2           # (chunk, 1) XLU reduce
        o_ref[lo:lo + chunk, :] = y.astype(o_ref.dtype)


def _round_up(n, m):
    return ((n + m - 1) // m) * m


@partial(jax.jit, static_argnames=("tile_b",))
def value_network_forward(x, w1, b1, w2, b2, *, tile_b=4096):
    """Forward pass of ValueNetwork.  x: (B, d_in) -> (B, 1) float32."""
    x = jnp.asarray(x, jnp.float32)
    B, d_in = x.shape
    H = w1.shape[1]

    w1c = jnp.asarray(w1, jnp.float32)                      # (d_in, H)
    b1c = jnp.asarray(b1, jnp.float32).reshape(1, H)        # lane-dense row
    w2_arr = jnp.asarray(w2, jnp.float32)
    assert w2_arr.size == H, "kernel folds the N=1 output layer into a lane-reduce"
    w2c = w2_arr.reshape(1, H)                              # lane-dense row
    b2s = jnp.asarray(b2, jnp.float32).reshape(1, 1)        # SMEM scalar

    # Batch tile: large enough to amortize the ~0.35 us/step grid overhead,
    # but clamped so the grid has >= 2 steps (v7x: both TensorCores get work)
    # whenever the batch allows it.  Always a multiple of _CHUNK (>= 8 sublanes).
    tile = _round_up(max(tile_b, _CHUNK), _CHUNK)
    half = _round_up(pl.cdiv(B, 2), _CHUNK)
    TB = min(tile, half)
    Bp = _round_up(B, TB)
    grid = Bp // TB

    # Only remaining wrapper-side data movement: pad the batch tail (skipped
    # entirely when B already divides the tile).
    x_p = x if Bp == B else jnp.pad(x, ((0, Bp - B), (0, 0)))

    out = pl.pallas_call(
        value_net_kernel,
        out_shape=jax.ShapeDtypeStruct((Bp, 1), jnp.float32),
        grid=(grid,),
        in_specs=[
            pl.BlockSpec((TB, d_in), lambda i: (i, 0)),          # batch tile (native layout)
            pl.BlockSpec((d_in, H), lambda i: (0, 0)),           # resident weights
            pl.BlockSpec((1, H), lambda i: (0, 0)),              # resident bias (lane-dense)
            pl.BlockSpec((1, H), lambda i: (0, 0)),              # resident w2 (lane-dense)
            pl.BlockSpec(memory_space=pltpu.MemorySpace.SMEM),   # b2 scalar in SMEM
        ],
        out_specs=pl.BlockSpec((TB, 1), lambda i: (i, 0)),
        compiler_params=pltpu.CompilerParams(
            dimension_semantics=("parallel",),   # batch tiles shard across TCs (v7x)
            vmem_limit_bytes=32 * 1024 * 1024,   # safe on v7x's 64 MiB physical VMEM
        ),
    )(x_p, w1c, b1c, w2c, b2s)

    return out if Bp == B else out[:B]


def init_params(key, input_dim=2, hidden_dim=128, output_dim=1):
    # Deterministic synthetic init (PyTorch-style uniform bounds), not a checkpoint load.
    k1, k2, k3, k4 = jax.random.split(key, 4)
    bound1 = 1.0 / (input_dim ** 0.5)
    bound2 = 1.0 / (hidden_dim ** 0.5)
    w1 = jax.random.uniform(k1, (input_dim, hidden_dim), jnp.float32, -bound1, bound1)
    b1 = jax.random.uniform(k2, (hidden_dim,), jnp.float32, -bound1, bound1)
    w2 = jax.random.uniform(k3, (hidden_dim, output_dim), jnp.float32, -bound2, bound2)
    b2 = jax.random.uniform(k4, (output_dim,), jnp.float32, -bound2, bound2)
    return w1, b1, w2, b2


def _reference(x, w1, b1, w2, b2):
    hi = jax.lax.Precision.HIGHEST
    h = jnp.maximum(jnp.dot(x, w1, precision=hi) + b1, 0.0)
    return jnp.dot(h, w2, precision=hi) + b2


if __name__ == "__main__":
    key = jax.random.PRNGKey(0)
    pkey, xkey1, xkey2 = jax.random.split(key, 3)

    input_dim, hidden_dim, output_dim = 2, 128, 1
    w1, b1, w2, b2 = init_params(pkey, input_dim, hidden_dim, output_dim)

    # Small batch: single tile (padded to 128 rows), one fused chunk.
    batch = 8
    x = jax.random.normal(xkey1, (batch, input_dim), jnp.float32)
    out = jax.block_until_ready(value_network_forward(x, w1, b1, w2, b2))
    ref = _reference(x, w1, b1, w2, b2)
    assert out.shape == (batch, output_dim)
    assert jnp.allclose(out, ref, atol=1e-5, rtol=1e-5)

    # Non-divisible batch: exercises the >=2-tile clamp (grid=2 -> both v7x TCs),
    # in-tile chunking, and tail padding/slicing.
    batch2 = 600
    x2 = jax.random.normal(xkey2, (batch2, input_dim), jnp.float32)
    out2 = jax.block_until_ready(value_network_forward(x2, w1, b1, w2, b2))
    ref2 = _reference(x2, w1, b1, w2, b2)
    assert out2.shape == (batch2, output_dim)
    assert jnp.allclose(out2, ref2, atol=1e-5, rtol=1e-5)

    print("KERNEL_OK")
</pallas_src>

<mosaic_0001>
module attributes {stable_mosaic.version = 11 : i64} {
  func.func @value_net_kernel(%arg0: i32, %arg1: memref<128x2xf32, #tpu.memory_space<vmem>>, %arg2: memref<2x128xf32, #tpu.memory_space<vmem>>, %arg3: memref<1x128xf32, #tpu.memory_space<vmem>>, %arg4: memref<1x128xf32, #tpu.memory_space<vmem>>, %arg5: memref<1x1xf32, #tpu.memory_space<smem>>, %arg6: memref<128x1xf32, #tpu.memory_space<vmem>>) attributes {dimension_semantics = [#tpu.dimension_semantics<parallel>], iteration_bounds = array<i64: 1>, scalar_prefetch = 0 : i64, scratch_operands = 0 : i64, tpu.core_type = #tpu.core_type<tc>, window_params = [{transform_indices = @transform_0, window_bounds = array<i64: 128, 2>}, {pipeline_mode = #tpu.pipeline_mode<synchronous>, transform_indices = @transform_1, window_bounds = array<i64: 2, 128>}, {pipeline_mode = #tpu.pipeline_mode<synchronous>, transform_indices = @transform_2, window_bounds = array<i64: 1, 128>}, {pipeline_mode = #tpu.pipeline_mode<synchronous>, transform_indices = @transform_3, window_bounds = array<i64: 1, 128>}, {transform_indices = @transform_4, window_bounds = array<i64: 1, 1>}, {transform_indices = @transform_5, window_bounds = array<i64: 128, 1>}]} {
    %c0 = arith.constant 0 : index
    %c0_0 = arith.constant 0 : index
    %0 = vector.load %arg2[%c0, %c0_0] : memref<2x128xf32, #tpu.memory_space<vmem>>, vector<1x128xf32>
    %c1 = arith.constant 1 : index
    %c0_1 = arith.constant 0 : index
    %1 = vector.load %arg2[%c1, %c0_1] : memref<2x128xf32, #tpu.memory_space<vmem>>, vector<1x128xf32>
    %c0_2 = arith.constant 0 : index
    %c0_3 = arith.constant 0 : index
    %2 = vector.load %arg3[%c0_2, %c0_3] : memref<1x128xf32, #tpu.memory_space<vmem>>, vector<1x128xf32>
    %c0_4 = arith.constant 0 : index
    %c0_5 = arith.constant 0 : index
    %3 = vector.load %arg4[%c0_4, %c0_5] : memref<1x128xf32, #tpu.memory_space<vmem>>, vector<1x128xf32>
    %c0_6 = arith.constant 0 : index
    %c0_7 = arith.constant 0 : index
    %4 = memref.load %arg5[%c0_6, %c0_7] : memref<1x1xf32, #tpu.memory_space<smem>>
    %c0_8 = arith.constant 0 : index
    %c0_9 = arith.constant 0 : index
    %5 = vector.load %arg1[%c0_8, %c0_9] : memref<128x2xf32, #tpu.memory_space<vmem>>, vector<128x1xf32>
    %6 = vector.broadcast %5 : vector<128x1xf32> to vector<128x128xf32>
    %7 = vector.broadcast %0 : vector<1x128xf32> to vector<128x128xf32>
    %8 = arith.mulf %6, %7 : vector<128x128xf32>
    %c0_10 = arith.constant 0 : index
    %c1_11 = arith.constant 1 : index
    %9 = vector.load %arg1[%c0_10, %c1_11] : memref<128x2xf32, #tpu.memory_space<vmem>>, vector<128x1xf32>
    %10 = vector.broadcast %9 : vector<128x1xf32> to vector<128x128xf32>
    %11 = vector.broadcast %1 : vector<1x128xf32> to vector<128x128xf32>
    %12 = arith.mulf %10, %11 : vector<128x128xf32>
    %13 = arith.addf %8, %12 : vector<128x128xf32>
    %14 = vector.broadcast %2 : vector<1x128xf32> to vector<128x128xf32>
    %15 = arith.addf %13, %14 : vector<128x128xf32>
    %cst = arith.constant 0.000000e+00 : f32
    %16 = vector.broadcast %cst : f32 to vector<128x128xf32>
    %17 = arith.maximumf %15, %16 : vector<128x128xf32>
    %18 = vector.broadcast %3 : vector<1x128xf32> to vector<128x128xf32>
    %19 = arith.mulf %17, %18 : vector<128x128xf32>
    %cst_12 = arith.constant dense<0.000000e+00> : vector<128xf32>
    %20 = vector.multi_reduction <add>, %19, %cst_12 [1] : vector<128x128xf32> to vector<128xf32>
    %21 = vector.shape_cast %20 : vector<128xf32> to vector<128x1xf32>
    %22 = vector.broadcast %4 : f32 to vector<128x1xf32>
    %23 = arith.addf %21, %22 : vector<128x1xf32>
    %c0_13 = arith.constant 0 : index
    %c0_14 = arith.constant 0 : index
    %24 = vector.load %arg6[%c0_13, %c0_14] : memref<128x1xf32, #tpu.memory_space<vmem>>, vector<128x1xf32>
    tpu.vector_store %arg6[%c0_13, %c0_14], %23 {strides = array<i32>} : memref<128x1xf32, #tpu.memory_space<vmem>>, vector<128x1xf32>,
    return
  }
  func.func @transform_0(%arg0: i32) -> (i32, i32) {
    %c0_i32 = arith.constant 0 : i32
    %c0_i32_0 = arith.constant 0 : i32
    return %arg0, %c0_i32 : i32, i32
  }
  func.func @transform_1(%arg0: i32) -> (i32, i32) {
    %c0_i32 = arith.constant 0 : i32
    %c0_i32_0 = arith.constant 0 : i32
    %c0_i32_1 = arith.constant 0 : i32
    return %c0_i32, %c0_i32_0 : i32, i32
  }
  func.func @transform_2(%arg0: i32) -> (i32, i32) {
    %c0_i32 = arith.constant 0 : i32
    %c0_i32_0 = arith.constant 0 : i32
    %c0_i32_1 = arith.constant 0 : i32
    return %c0_i32, %c0_i32_0 : i32, i32
  }
  func.func @transform_3(%arg0: i32) -> (i32, i32) {
    %c0_i32 = arith.constant 0 : i32
    %c0_i32_0 = arith.constant 0 : i32
    %c0_i32_1 = arith.constant 0 : i32
    return %c0_i32, %c0_i32_0 : i32, i32
  }
  func.func @transform_4(%arg0: i32) -> (i32, i32) {
    %c0_i32 = arith.constant 0 : i32
    %c0_i32_0 = arith.constant 0 : i32
    %c0_i32_1 = arith.constant 0 : i32
    return %c0_i32, %c0_i32_0 : i32, i32
  }
  func.func @transform_5(%arg0: i32) -> (i32, i32) {
    %c0_i32 = arith.constant 0 : i32
    %c0_i32_0 = arith.constant 0 : i32
    return %arg0, %c0_i32 : i32, i32
  }
}

</mosaic_0001>

<bundles_post_ra>
// kernel: value_network_forward.1
= control target key start
LH: loop header
LB: loop body
LE: loop exit
PB: predicated region body
PF: predicated region fallthrough
CT: control target
= control target key end

     0   :  { %v382_v0 = vmov 0   ;;  %v383_v17 = vmov 1   ;;  %vm351_vm0 = vcmask 7168   ;;  %s637_s0 = inlined_call_operand.vmem [shape: f32[128,2], index: 0, kind: input, shape index: {}]   ;;  %s638_s1 = inlined_call_operand.vmem [shape: f32[2,128], index: 1, kind: input, shape index: {}]   ;;  %s639_s2 = inlined_call_operand.vmem [shape: f32[1,128], index: 2, kind: input, shape index: {}]   ;;  %s640_s3 = inlined_call_operand.vmem [shape: f32[1,128], index: 3, kind: input, shape index: {}]   ;;  %s641_s4 = inlined_call_operand.<no memory space> [shape: f32[1,1], index: 4, kind: input, shape index: {}]   ;;  %s642_s5 = inlined_call_operand.vmem [shape: f32[128,1], index: 5, kind: output, shape index: {}]  }
   0x1   :  { %379 = vset.pattern.permute.xlu1 %v382_v0  ;;  %378 = vset.pattern.permute.xlu0 %v382_v0  ;;  %v28_v1 = vld [vmem:[%s637_s0 + $0x10] sm:$0xff]  ;;  %v26_v2 = vld [vmem:[%s637_s0] sm:$0xff]  ;;  %v29_v3 = vld [vmem:[%s637_s0 + $0x18] sm:$0xff] }
   0x2   :  { %54 = vperm.xlu1 %379, %v28_v1   ;;  %44 = vperm.xlu0 %378, %v26_v2   ;;  %v27_v4 = vld [vmem:[%s637_s0 + $0x8] sm:$0xff]  ;;  %v30_v6 = vld [vmem:[%s637_s0 + $0x20] sm:$0xff]  ;;  %v33_v7 = vld [vmem:[%s637_s0 + $0x38] sm:$0xff] }
   0x3   :  { %v31_v5 = vld [vmem:[%s637_s0 + $0x28] sm:$0xff]  ;;  %v32_v8 = vld [vmem:[%s637_s0 + $0x30] sm:$0xff]  ;;  %v34_v10 = vld [vmem:[%s637_s0 + $0x40] sm:$0xff] }
   0x4   :  { %v35_v9 = vld [vmem:[%s637_s0 + $0x48] sm:$0xff]  ;;  %v37_v11 = vld [vmem:[%s637_s0 + $0x58] sm:$0xff]  ;;  %v36_v12 = vld [vmem:[%s637_s0 + $0x50] sm:$0xff] }
   0x5   :  { %v39_v13 = vld [vmem:[%s637_s0 + $0x68] sm:$0xff]  ;;  %v38_v14 = vld [vmem:[%s637_s0 + $0x60] sm:$0xff]  ;;  %v41_v15 = vld [vmem:[%s637_s0 + $0x78] sm:$0xff] }
   0x6   :  { %59 = vperm.xlu1 %379, %v29_v3   ;;  %49 = vperm.xlu0 %378, %v27_v4   ;;  %v40_v16 = vld [vmem:[%s637_s0 + $0x70] sm:$0xff]  ;;  %v481_v34 = vld [vmem:[%s638_s1] ss:$0 sm:$0xff]  ;;  %v486_v35 = vld [vmem:[%s638_s1 + $0x1] ss:$0 sm:$0xff] }
   0x7   :  { %v495_v42 = vld [vmem:[%s639_s2] ss:$0 sm:$0xff] }
   0x8   :  { %v506_v53 = vld [vmem:[%s640_s3] ss:$0 sm:$0xff] }
   0xa   :  { %69 = vperm.xlu1 %379, %v31_v5   ;;  %64 = vperm.xlu0 %378, %v30_v6  }
   0xe   :  { %79 = vperm.xlu1 %379, %v33_v7   ;;  %74 = vperm.xlu0 %378, %v32_v8  }
  0x12   :  { %89 = vperm.xlu1 %379, %v35_v9   ;;  %84 = vperm.xlu0 %378, %v34_v10  }
  0x16   :  { %99 = vperm.xlu1 %379, %v37_v11   ;;  %94 = vperm.xlu0 %378, %v36_v12  }
  0x1a   :  { %109 = vperm.xlu1 %379, %v39_v13   ;;  %104 = vperm.xlu0 %378, %v38_v14  }
  0x1e   :  { %119 = vperm.xlu1 %379, %v41_v15   ;;  %114 = vperm.xlu0 %378, %v40_v16  }
  0x22   :  { %381 = vset.pattern.permute.xlu1 %v383_v17  ;;  %380 = vset.pattern.permute.xlu0 %v383_v17 }
  0x23   :  { %147 = vperm.xlu1 %381, %v27_v4   ;;  %143 = vperm.xlu0 %380, %v26_v2  }
  0x27   :  { %151 = vperm.xlu1 %381, %v28_v1   ;;  %155 = vperm.xlu0 %380, %v29_v3  }
  0x2b   :  { %159 = vperm.xlu1 %381, %v30_v6   ;;  %163 = vperm.xlu0 %380, %v31_v5  }
  0x2f   :  { %167 = vperm.xlu1 %381, %v32_v8   ;;  %171 = vperm.xlu0 %380, %v33_v7  }
  0x33   :  { %175 = vperm.xlu1 %381, %v34_v10   ;;  %179 = vperm.xlu0 %380, %v35_v9  }
  0x37   :  { %183 = vperm.xlu1 %381, %v36_v12   ;;  %187 = vperm.xlu0 %380, %v37_v11  }
  0x3b   :  { %191 = vperm.xlu1 %381, %v38_v14   ;;  %195 = vperm.xlu0 %380, %v39_v13  }
  0x3f   :  { %199 = vperm.xlu1 %381, %v40_v16   ;;  %203 = vperm.xlu0 %380, %v41_v15  }
  0x7d   :  { %v55_v18 = vpop.permute.xlu1 %54  ;;  %v45_v19 = vpop.permute.xlu0 %44 }
  0x7e   :  { %v126_v38 = vmul.f32 %v481_v34, %v45_v19  ;;  %v128_v45 = vmul.f32 %v481_v34, %v55_v18 }
  0x81   :  { %v60_v20 = vpop.permute.xlu1 %59  ;;  %v50_v21 = vpop.permute.xlu0 %49 }
  0x82   :  { %v127_v39 = vmul.f32 %v481_v34, %v50_v21  ;;  %v129_v46 = vmul.f32 %v481_v34, %v60_v20 }
  0x85   :  { %v70_v22 = vpop.permute.xlu1 %69  ;;  %v65_v23 = vpop.permute.xlu0 %64 }
  0x86   :  { %v131_v58 = vmul.f32 %v481_v34, %v70_v22  ;;  %v130_v59 = vmul.f32 %v481_v34, %v65_v23 }
  0x89   :  { %v80_v24 = vpop.permute.xlu1 %79  ;;  %v75_v25 = vpop.permute.xlu0 %74 }
  0x8a   :  { %v133_v6 = vmul.f32 %v481_v34, %v80_v24  ;;  %v132_v7 = vmul.f32 %v481_v34, %v75_v25 }
  0x8d   :  { %v462_v26 = vpop.permute.xlu1 %89  ;;  %v464_v27 = vpop.permute.xlu0 %84 }
  0x8e   :  { %v135_v22 = vmul.f32 %v481_v34, %v462_v26  ;;  %v134_v23 = vmul.f32 %v481_v34, %v464_v27 }
  0x91   :  { %v466_v28 = vpop.permute.xlu1 %99  ;;  %v468_v29 = vpop.permute.xlu0 %94 }
  0x92   :  { %v137_v27 = vmul.f32 %v481_v34, %v466_v28 }
  0x95   :  { %v470_v30 = vpop.permute.xlu1 %109  ;;  %v472_v31 = vpop.permute.xlu0 %104 }
  0x99   :  { %v474_v32 = vpop.permute.xlu1 %119  ;;  %v476_v33 = vpop.permute.xlu0 %114 }
  0x9e   :  { %v148_v36 = vpop.permute.xlu1 %147  ;;  %v144_v37 = vpop.permute.xlu0 %143 }
  0x9f   :  { %v211_v40 = vmul.f32 %v486_v35, %v148_v36  ;;  %v210_v41 = vmul.f32 %v486_v35, %v144_v37 }
  0xa1   :  { %v227_v43 = vadd.f32 %v211_v40, %v127_v39  ;;  %v226_v44 = vadd.f32 %v210_v41, %v126_v38 }
  0xa2   :  { %v152_v47 = vpop.permute.xlu1 %151  ;;  %v156_v48 = vpop.permute.xlu0 %155 }
  0xa3   :  { %v212_v49 = vmul.f32 %v486_v35, %v152_v47  ;;  %v213_v50 = vmul.f32 %v486_v35, %v156_v48  ;;  %v249_v51 = vadd.f32 %v495_v42, %v227_v43  ;;  %v248_v52 = vadd.f32 %v495_v42, %v226_v44 }
  0xa4   :  { %v136_v44 = vmul.f32 %v481_v34, %v468_v29 }
  0xa5   :  { %v228_v54 = vadd.f32 %v212_v49, %v128_v45  ;;  %v229_v55 = vadd.f32 %v213_v50, %v129_v46  ;;  %v265_v56 = vmax.f32 %v249_v51, 0.0  ;;  %v264_v57 = vmax.f32 %v248_v52, 0.0 }
  0xa6   :  { %v160_v60 = vpop.permute.xlu1 %159  ;;  %v164_v61 = vpop.permute.xlu0 %163 }
  0xa7   :  { %v214_v62 = vmul.f32 %v486_v35, %v160_v60  ;;  %v215_v63 = vmul.f32 %v486_v35, %v164_v61  ;;  %v287_v0 = vmul.f32 %v506_v53, %v265_v56  ;;  %v286_v1 = vmul.f32 %v506_v53, %v264_v57 }
  0xa8   :  { %v250_v2 = vadd.f32 %v495_v42, %v228_v54  ;;  %v251_v3 = vadd.f32 %v495_v42, %v229_v55 }
  0xa9   :  { %v230_v4 = vadd.f32 %v214_v62, %v130_v59  ;;  %v231_v5 = vadd.f32 %v215_v63, %v131_v58  ;;  %304 = vadd.xlane.f32.xlu0 %v287_v0  ;;  %302 = vadd.xlane.f32.xlu1 %v286_v1  ;;  %v139_v58 = vmul.f32 %v481_v34, %v470_v30 }
  0xaa   :  { %v168_v8 = vpop.permute.xlu1 %167  ;;  %v172_v9 = vpop.permute.xlu0 %171  ;;  %v266_v10 = vmax.f32 %v250_v2, 0.0  ;;  %v267_v11 = vmax.f32 %v251_v3, 0.0  ;;  %v138_v59 = vmul.f32 %v481_v34, %v472_v31  ;;  %v141_v31 = vmul.f32 %v481_v34, %v474_v32 }
  0xab   :  { %v216_v12 = vmul.f32 %v486_v35, %v168_v8  ;;  %v217_v13 = vmul.f32 %v486_v35, %v172_v9  ;;  %v252_v14 = vadd.f32 %v495_v42, %v230_v4  ;;  %v253_v15 = vadd.f32 %v495_v42, %v231_v5 }
  0xac   :  { %v288_v16 = vmul.f32 %v506_v53, %v266_v10  ;;  %v289_v17 = vmul.f32 %v506_v53, %v267_v11  ;;  %v140_v5 = vmul.f32 %v481_v34, %v476_v33 }
  0xad   :  { %v232_v18 = vadd.f32 %v216_v12, %v132_v7  ;;  %v233_v19 = vadd.f32 %v217_v13, %v133_v6  ;;  %v268_v20 = vmax.f32 %v252_v14, 0.0  ;;  %v269_v21 = vmax.f32 %v253_v15, 0.0 }
  0xae   :  { %306 = vadd.xlane.f32.xlu0 %v288_v16  ;;  %308 = vadd.xlane.f32.xlu1 %v289_v17  ;;  %v176_v24 = vpop.permute.xlu1 %175  ;;  %v180_v25 = vpop.permute.xlu0 %179 }
  0xaf   :  { %v218_v36 = vmul.f32 %v486_v35, %v176_v24  ;;  %v219_v37 = vmul.f32 %v486_v35, %v180_v25  ;;  %v290_v38 = vmul.f32 %v506_v53, %v268_v20  ;;  %v291_v39 = vmul.f32 %v506_v53, %v269_v21 }
  0xb0   :  { %v254_v40 = vadd.f32 %v495_v42, %v232_v18  ;;  %v255_v41 = vadd.f32 %v495_v42, %v233_v19  ;;  %v334_v24 = vstv %s641_s4 }
  0xb1   :  { %v234_v26 = vadd.f32 %v218_v36, %v134_v23  ;;  %v235_v43 = vadd.f32 %v219_v37, %v135_v22 }
  0xb2   :  { %310 = vadd.xlane.f32.xlu0 %v290_v38  ;;  %312 = vadd.xlane.f32.xlu1 %v291_v39  ;;  %v184_v45 = vpop.permute.xlu1 %183  ;;  %v188_v46 = vpop.permute.xlu0 %187  ;;  %v270_v47 = vmax.f32 %v254_v40, 0.0  ;;  %v271_v48 = vmax.f32 %v255_v41, 0.0 }
  0xb3   :  { %v220_v49 = vmul.f32 %v486_v35, %v184_v45  ;;  %v221_v50 = vmul.f32 %v486_v35, %v188_v46  ;;  %v256_v51 = vadd.f32 %v495_v42, %v234_v26  ;;  %v257_v52 = vadd.f32 %v495_v42, %v235_v43 }
  0xb4   :  { %v292_v54 = vmul.f32 %v506_v53, %v270_v47  ;;  %v293_v28 = vmul.f32 %v506_v53, %v271_v48 }
  0xb5   :  { %v236_v55 = vadd.f32 %v220_v49, %v136_v44  ;;  %v237_v29 = vadd.f32 %v221_v50, %v137_v27  ;;  %v272_v56 = vmax.f32 %v256_v51, 0.0  ;;  %v273_v57 = vmax.f32 %v257_v52, 0.0 }
  0xb6   :  { %314 = vadd.xlane.f32.xlu0 %v292_v54  ;;  %316 = vadd.xlane.f32.xlu1 %v293_v28  ;;  %v192_v60 = vpop.permute.xlu1 %191  ;;  %v196_v61 = vpop.permute.xlu0 %195 }
  0xb7   :  { %v222_v62 = vmul.f32 %v486_v35, %v192_v60  ;;  %v223_v63 = vmul.f32 %v486_v35, %v196_v61  ;;  %v294_v0 = vmul.f32 %v506_v53, %v272_v56  ;;  %v295_v1 = vmul.f32 %v506_v53, %v273_v57 }
  0xb8   :  { %v258_v2 = vadd.f32 %v495_v42, %v236_v55  ;;  %v259_v3 = vadd.f32 %v495_v42, %v237_v29 }
  0xb9   :  { %v238_v30 = vadd.f32 %v222_v62, %v138_v59  ;;  %v239_v4 = vadd.f32 %v223_v63, %v139_v58 }
  0xba   :  { %318 = vadd.xlane.f32.xlu0 %v294_v0  ;;  %320 = vadd.xlane.f32.xlu1 %v295_v1  ;;  %v200_v6 = vpop.permute.xlu1 %199  ;;  %v204_v7 = vpop.permute.xlu0 %203  ;;  %v274_v8 = vmax.f32 %v258_v2, 0.0  ;;  %v275_v9 = vmax.f32 %v259_v3, 0.0 }
  0xbb   :  { %v224_v10 = vmul.f32 %v486_v35, %v200_v6  ;;  %v225_v11 = vmul.f32 %v486_v35, %v204_v7  ;;  %v260_v12 = vadd.f32 %v495_v42, %v238_v30  ;;  %v261_v13 = vadd.f32 %v495_v42, %v239_v4 }
  0xbc   :  { %v296_v14 = vmul.f32 %v506_v53, %v274_v8  ;;  %v297_v32 = vmul.f32 %v506_v53, %v275_v9 }
  0xbd   :  { %v240_v15 = vadd.f32 %v224_v10, %v140_v5  ;;  %v241_v33 = vadd.f32 %v225_v11, %v141_v31  ;;  %v276_v34 = vmax.f32 %v260_v12, 0.0  ;;  %v277_v16 = vmax.f32 %v261_v13, 0.0 }
  0xbe   :  { %322 = vadd.xlane.f32.xlu0 %v296_v14  ;;  %324 = vadd.xlane.f32.xlu1 %v297_v32 }
  0xbf   :  { %v298_v17 = vmul.f32 %v506_v53, %v276_v34  ;;  %v299_v18 = vmul.f32 %v506_v53, %v277_v16  ;;  %v262_v35 = vadd.f32 %v495_v42, %v240_v15  ;;  %v263_v19 = vadd.f32 %v495_v42, %v241_v33 }
  0xc1   :  { %v278_v20 = vmax.f32 %v262_v35, 0.0  ;;  %v279_v21 = vmax.f32 %v263_v19, 0.0 }
  0xc2   :  { %326 = vadd.xlane.f32.xlu0 %v298_v17  ;;  %328 = vadd.xlane.f32.xlu1 %v299_v18 }
  0xc3   :  { %v300_v22 = vmul.f32 %v506_v53, %v278_v20  ;;  %v301_v23 = vmul.f32 %v506_v53, %v279_v21 }
  0xc6   :  { %330 = vadd.xlane.f32.xlu0 %v300_v22  ;;  %332 = vadd.xlane.f32.xlu1 %v301_v23 }
 0x132   :  { %v303_v25 = vpop.xlane.xlu1 %302  ;;  %v305_v36 = vpop.xlane.xlu0 %304 }
 0x133   :  { %v335_v37 = vadd.f32 %v334_v24, %v303_v25  ;;  %v336_v38 = vadd.f32 %v334_v24, %v305_v36 }
 0x135   :  { %352 = vst.msk [vmem:[%s642_s5] sm:$0xff] %vm351_vm0, %v335_v37  ;;  %353 = vst.msk [vmem:[%s642_s5 + $0x8] sm:$0xff] %vm351_vm0, %v336_v38 }
 0x137   :  { %v309_v42 = vpop.xlane.xlu1 %308  ;;  %v307_v53 = vpop.xlane.xlu0 %306 }
 0x138   :  { %v338_v39 = vadd.f32 %v334_v24, %v309_v42  ;;  %v337_v40 = vadd.f32 %v334_v24, %v307_v53 }
 0x13a   :  { %355 = vst.msk [vmem:[%s642_s5 + $0x18] sm:$0xff] %vm351_vm0, %v338_v39  ;;  %354 = vst.msk [vmem:[%s642_s5 + $0x10] sm:$0xff] %vm351_vm0, %v337_v40 }
 0x13b   :  { %v313_v41 = vpop.xlane.xlu1 %312  ;;  %v311_v26 = vpop.xlane.xlu0 %310 }
 0x13c   :  { %v340_v43 = vadd.f32 %v334_v24, %v313_v41  ;;  %v339_v27 = vadd.f32 %v334_v24, %v311_v26 }
 0x13e   :  { %357 = vst.msk [vmem:[%s642_s5 + $0x28] sm:$0xff] %vm351_vm0, %v340_v43  ;;  %356 = vst.msk [vmem:[%s642_s5 + $0x20] sm:$0xff] %vm351_vm0, %v339_v27 }
 0x13f   :  { %v317_v44 = vpop.xlane.xlu1 %316  ;;  %v315_v45 = vpop.xlane.xlu0 %314 }
 0x140   :  { %v342_v46 = vadd.f32 %v334_v24, %v317_v44  ;;  %v341_v47 = vadd.f32 %v334_v24, %v315_v45 }
 0x142   :  { %359 = vst.msk [vmem:[%s642_s5 + $0x38] sm:$0xff] %vm351_vm0, %v342_v46  ;;  %358 = vst.msk [vmem:[%s642_s5 + $0x30] sm:$0xff] %vm351_vm0, %v341_v47 }
 0x143   :  { %v321_v48 = vpop.xlane.xlu1 %320  ;;  %v319_v49 = vpop.xlane.xlu0 %318 }
 0x144   :  { %v344_v50 = vadd.f32 %v334_v24, %v321_v48  ;;  %v343_v51 = vadd.f32 %v334_v24, %v319_v49 }
 0x146   :  { %361 = vst.msk [vmem:[%s642_s5 + $0x48] sm:$0xff] %vm351_vm0, %v344_v50  ;;  %360 = vst.msk [vmem:[%s642_s5 + $0x40] sm:$0xff] %vm351_vm0, %v343_v51 }
 0x147   :  { %v325_v52 = vpop.xlane.xlu1 %324  ;;  %v323_v54 = vpop.xlane.xlu0 %322 }
 0x148   :  { %v346_v28 = vadd.f32 %v334_v24, %v325_v52  ;;  %v345_v55 = vadd.f32 %v334_v24, %v323_v54 }
 0x14a   :  { %363 = vst.msk [vmem:[%s642_s5 + $0x58] sm:$0xff] %vm351_vm0, %v346_v28  ;;  %362 = vst.msk [vmem:[%s642_s5 + $0x50] sm:$0xff] %vm351_vm0, %v345_v55 }
 0x14b   :  { %v329_v29 = vpop.xlane.xlu1 %328  ;;  %v327_v56 = vpop.xlane.xlu0 %326 }
 0x14c   :  { %v348_v57 = vadd.f32 %v334_v24, %v329_v29  ;;  %v347_v58 = vadd.f32 %v334_v24, %v327_v56 }
 0x14e   :  { %365 = vst.msk [vmem:[%s642_s5 + $0x68] sm:$0xff] %vm351_vm0, %v348_v57  ;;  %364 = vst.msk [vmem:[%s642_s5 + $0x60] sm:$0xff] %vm351_vm0, %v347_v58 }
 0x14f   :  { %v333_v59 = vpop.xlane.xlu1 %332  ;;  %v331_v60 = vpop.xlane.xlu0 %330 }
 0x150   :  { %v350_v61 = vadd.f32 %v334_v24, %v333_v59  ;;  %v349_v62 = vadd.f32 %v334_v24, %v331_v60 }
 0x152   :  { %367 = vst.msk [vmem:[%s642_s5 + $0x78] sm:$0xff] %vm351_vm0, %v350_v61  ;;  %366 = vst.msk [vmem:[%s642_s5 + $0x70] sm:$0xff] %vm351_vm0, %v349_v62 }

</bundles_post_ra>
